<compile_context>
chip_gen: v5e
topology: v5e:2x2
jax: 0.10.0
libtpu: 0.0.40
codegen_flags: <defaults>
</compile_context>

<pallas_src>
import jax
import jax.numpy as jnp
from jax.experimental import pallas as pl
from jax.experimental.pallas import tpu as pltpu


def fp_ebc_kernel(idx_ref, len_ref, posw_ref, table_ref, out_ref, acc_ref):
    """Grid = (feature, batch_tile, table_row_tile).  Last axis is a reduction
    over table-row tiles, accumulated in f32 VMEM scratch."""
    n = pl.program_id(2)

    @pl.when(n == 0)
    def _init():
        acc_ref[...] = jnp.zeros_like(acc_ref)

    idx = idx_ref[0]              # [TB, L] int32  padded bag members
    lengths = len_ref[0]          # [TB, 1] int32  true bag lengths
    posw = posw_ref[0]            # [1,  L] f32    position weights
    table = table_ref[0]          # [TN, D] bf16   table row tile

    tb, L = idx.shape
    tn = table.shape[0]

    # --- feature processor (PositionWeightedModule): a single select, no
    # separate mask-cast + multiply.  w[b, l] = posw[l] if l < len[b] else 0.
    pos = jax.lax.broadcasted_iota(jnp.int32, (tb, L), 1)
    w = jnp.where(pos < lengths, posw, 0.0)                        # [TB, L] f32

    # --- per-N-tile weighted one-hot (handles duplicate indices):
    #     s[b, j] = sum_l w[b, l] * (idx[b, l] == n*TN + j)
    lane = jax.lax.broadcasted_iota(jnp.int32, (1, 1, tn), 2) + n * tn
    sel = jnp.where(idx[:, :, None] == lane, w[:, :, None], 0.0)   # [TB,L,TN]
    s = jnp.sum(sel, axis=1)                                       # [TB, TN]

    # --- weighted-sum pooling: bf16 x bf16 MXU matmul, f32 accumulation.
    acc_ref[...] += jnp.dot(s.astype(jnp.bfloat16), table,
                            preferred_element_type=jnp.float32)

    @pl.when(n == pl.num_programs(2) - 1)
    def _finalize():
        out_ref[...] = acc_ref[...].astype(out_ref.dtype)


def fp_embedding_bag_collection(indices, lengths, pos_weights, tables,
                                *, tb=None, tn=128):
    """Runs the Pallas kernel over (feature, batch-tile, row-tile) and returns
    the KeyedTensor-like output [B, F*D] (keys concatenated along last dim)."""
    F, B, L = indices.shape
    _, N, D = tables.shape

    if tb is None:
        tb = min(B, 128)
    tn = min(tn, N)

    # Pad batch / table-row dims to tile multiples. Zero-length padded bags and
    # zero padded table rows contribute nothing, so padding is correctness-neutral.
    Bp = pl.cdiv(B, tb) * tb
    Np = pl.cdiv(N, tn) * tn

    idx_p = jnp.pad(indices.astype(jnp.int32), ((0, 0), (0, Bp - B), (0, 0)))
    len_p = jnp.pad(lengths.astype(jnp.int32), ((0, 0), (0, Bp - B)))
    len_p = len_p.reshape(F, Bp, 1)
    posw3 = pos_weights.astype(jnp.float32).reshape(F, 1, L)
    tab_p = jnp.pad(tables.astype(jnp.bfloat16), ((0, 0), (0, Np - N), (0, 0)))

    nb = Bp // tb
    nn = Np // tn

    cost = pl.CostEstimate(
        flops=2 * F * Bp * Np * D,
        transcendentals=0,
        bytes_accessed=(tab_p.size * 2 * nb          # table tiles streamed per B tile
                        + idx_p.size * 4 + len_p.size * 4
                        + posw3.size * 4 + Bp * F * D * 4),
    )

    out = pl.pallas_call(
        fp_ebc_kernel,
        out_shape=jax.ShapeDtypeStruct((Bp, F * D), jnp.float32),
        grid_spec=pltpu.PrefetchScalarGridSpec(
            num_scalar_prefetch=0,
            grid=(F, nb, nn),                         # N reduction axis last
            in_specs=[
                pl.BlockSpec((1, tb, L), lambda f, b, n: (f, b, 0)),   # indices
                pl.BlockSpec((1, tb, 1), lambda f, b, n: (f, b, 0)),   # lengths
                pl.BlockSpec((1, 1, L), lambda f, b, n: (f, 0, 0)),    # pos weights
                pl.BlockSpec((1, tn, D), lambda f, b, n: (f, n, 0)),   # table tile
            ],
            # Lane-dense direct write into the KeyedTensor layout [B, F*D]:
            # feature f owns columns [f*D, (f+1)*D).
            out_specs=pl.BlockSpec((tb, D), lambda f, b, n: (b, f)),
            scratch_shapes=[pltpu.VMEM((tb, D), jnp.float32)],
        ),
        compiler_params=pltpu.CompilerParams(
            dimension_semantics=("parallel", "parallel", "arbitrary"),
            vmem_limit_bytes=32 * 1024 * 1024,
        ),
        cost_estimate=cost,
    )(idx_p, len_p, posw3, tab_p)

    return out[:B]


def _reference(indices, lengths, pos_weights, tables):
    """Plain-JAX reference of the same forward pass, for a sanity check."""
    F, B, L = indices.shape
    _, N, D = tables.shape

    def one_key(table, idx, lens, pw):
        emb = table.astype(jnp.float32)[idx]               # [B, L, D]
        pos = jnp.arange(L)[None, :]
        w = pw[None, :] * (pos < lens[:, None]).astype(jnp.float32)
        return jnp.sum(emb * w[..., None], axis=1)         # [B, D]

    per_key = jax.vmap(one_key)(tables, indices, lengths, pos_weights)
    return jnp.transpose(per_key, (1, 0, 2)).reshape(B, F * D)


if __name__ == "__main__":
    # Small deterministic synthetic config (mirrors the module example: two
    # keys "feature_1"/"feature_2", each with its own table + processor), with
    # shapes chosen so both the B-tile axis and the N-reduction axis are
    # exercised (2 batch tiles x 2 row tiles per feature).
    F = 2      # number of features / keys
    B = 32     # batch size (stride of the KJT)
    L = 8      # max bag length (jagged dim, padded)
    N = 256    # rows per embedding table
    D = 128    # embedding dim per table (lane-dense output)

    key = jax.random.PRNGKey(0)
    k_idx, k_len, k_tab, k_pw = jax.random.split(key, 4)

    indices = jax.random.randint(k_idx, (F, B, L), 0, N, dtype=jnp.int32)
    lengths = jax.random.randint(k_len, (F, B), 0, L + 1, dtype=jnp.int32)
    tables = (0.1 * jax.random.normal(k_tab, (F, N, D), dtype=jnp.float32)
              ).astype(jnp.bfloat16)
    # PositionWeightedModule initializes to 1.0; perturb deterministically so
    # the feature-processor path is actually exercised.
    pos_weights = 1.0 + 0.05 * jax.random.normal(k_pw, (F, L), dtype=jnp.float32)

    out = fp_embedding_bag_collection(indices, lengths, pos_weights, tables,
                                      tb=16, tn=128)
    out = jax.block_until_ready(out)

    ref = jax.block_until_ready(_reference(indices, lengths, pos_weights, tables))
    assert out.shape == (B, F * D), out.shape
    # bf16 MXU path vs f32 reference -> loosened tolerance.
    assert jnp.allclose(out, ref, atol=2e-2, rtol=2e-2), \
        float(jnp.max(jnp.abs(out - ref)))

    print("KERNEL_OK")
</pallas_src>

<mosaic_0001>
module attributes {stable_mosaic.version = 11 : i64} {
  func.func @fp_ebc_kernel(%arg0: i32, %arg1: i32, %arg2: i32, %arg3: memref<1x16x8xi32, #tpu.memory_space<vmem>>, %arg4: memref<1x16x1xi32, #tpu.memory_space<vmem>>, %arg5: memref<1x1x8xf32, #tpu.memory_space<vmem>>, %arg6: memref<1x128x128xbf16, #tpu.memory_space<vmem>>, %arg7: memref<16x128xf32, #tpu.memory_space<vmem>>, %arg8: memref<16x128xf32, #tpu.memory_space<vmem>>) attributes {dimension_semantics = [#tpu.dimension_semantics<parallel>, #tpu.dimension_semantics<parallel>, #tpu.dimension_semantics<arbitrary>], iteration_bounds = array<i64: 2, 2, 2>, scalar_prefetch = 0 : i64, scratch_operands = 1 : i64, tpu.core_type = #tpu.core_type<tc>, window_params = [{transform_indices = @transform_0, window_bounds = array<i64: 1, 16, 8>}, {transform_indices = @transform_1, window_bounds = array<i64: 1, 16, 1>}, {transform_indices = @transform_2, window_bounds = array<i64: 1, 1, 8>}, {transform_indices = @transform_3, window_bounds = array<i64: 1, 128, 128>}, {transform_indices = @transform_4, window_bounds = array<i64: 16, 128>}]} {
    %c0_i32 = arith.constant 0 : i32
    %0 = arith.cmpi eq, %arg2, %c0_i32 : i32
    %1 = arith.extui %0 : i1 to i32
    %c0_i32_0 = arith.constant 0 : i32
    %2 = arith.cmpi ne, %1, %c0_i32_0 : i32
    scf.if %2 {
      %cst_20 = arith.constant 0.000000e+00 : f32
      %40 = vector.broadcast %cst_20 : f32 to vector<16x128xf32>
      %c0_21 = arith.constant 0 : index
      %c0_22 = arith.constant 0 : index
      %41 = vector.load %arg8[%c0_21, %c0_22] : memref<16x128xf32, #tpu.memory_space<vmem>>, vector<16x128xf32>
      tpu.vector_store %arg8[%c0_21, %c0_22], %40 {strides = array<i32>} : memref<16x128xf32, #tpu.memory_space<vmem>>, vector<16x128xf32>,
    } else {
    }
    %c0 = arith.constant 0 : index
    %c0_1 = arith.constant 0 : index
    %c0_2 = arith.constant 0 : index
    %3 = vector.load %arg3[%c0, %c0_1, %c0_2] : memref<1x16x8xi32, #tpu.memory_space<vmem>>, vector<1x16x8xi32>
    %4 = vector.shape_cast %3 : vector<1x16x8xi32> to vector<16x8xi32>
    %c0_3 = arith.constant 0 : index
    %c0_4 = arith.constant 0 : index
    %c0_5 = arith.constant 0 : index
    %5 = vector.load %arg4[%c0_3, %c0_4, %c0_5] : memref<1x16x1xi32, #tpu.memory_space<vmem>>, vector<1x16x1xi32>
    %6 = vector.shape_cast %5 : vector<1x16x1xi32> to vector<16x1xi32>
    %c0_6 = arith.constant 0 : index
    %c0_7 = arith.constant 0 : index
    %c0_8 = arith.constant 0 : index
    %7 = vector.load %arg5[%c0_6, %c0_7, %c0_8] : memref<1x1x8xf32, #tpu.memory_space<vmem>>, vector<1x1x8xf32>
    %8 = vector.shape_cast %7 : vector<1x1x8xf32> to vector<1x8xf32>
    %c0_9 = arith.constant 0 : index
    %c0_10 = arith.constant 0 : index
    %c0_11 = arith.constant 0 : index
    %9 = vector.load %arg6[%c0_9, %c0_10, %c0_11] : memref<1x128x128xbf16, #tpu.memory_space<vmem>>, vector<1x128x128xbf16>
    %10 = vector.shape_cast %9 : vector<1x128x128xbf16> to vector<128x128xbf16>
    %11 = tpu.iota {dimensions = array<i32: 1>} : vector<16x8xi32>
    %12 = vector.broadcast %6 : vector<16x1xi32> to vector<16x8xi32>
    %13 = arith.cmpi slt, %11, %12 : vector<16x8xi32>
    %cst = arith.constant 0.000000e+00 : f32
    %14 = vector.shape_cast %8 : vector<1x8xf32> to vector<1x8xf32>
    %15 = vector.broadcast %14 : vector<1x8xf32> to vector<16x8xf32>
    %16 = vector.broadcast %cst : f32 to vector<16x8xf32>
    %17 = arith.select %13, %15, %16 : vector<16x8xi1>, vector<16x8xf32>
    %18 = tpu.iota {dimensions = array<i32: 2>} : vector<1x1x128xi32>
    %c128_i32 = arith.constant 128 : i32
    %19 = arith.muli %arg2, %c128_i32 : i32
    %20 = vector.broadcast %19 : i32 to vector<1x1x128xi32>
    %21 = arith.addi %18, %20 : vector<1x1x128xi32>
    %22 = vector.shape_cast %4 : vector<16x8xi32> to vector<16x8x1xi32>
    %23 = vector.broadcast %22 : vector<16x8x1xi32> to vector<16x8x128xi32>
    %24 = vector.broadcast %21 : vector<1x1x128xi32> to vector<16x8x128xi32>
    %25 = arith.cmpi eq, %23, %24 : vector<16x8x128xi32>
    %26 = vector.shape_cast %17 : vector<16x8xf32> to vector<16x8x1xf32>
    %cst_12 = arith.constant 0.000000e+00 : f32
    %27 = vector.shape_cast %26 : vector<16x8x1xf32> to vector<16x8x1xf32>
    %28 = vector.broadcast %27 : vector<16x8x1xf32> to vector<16x8x128xf32>
    %29 = vector.broadcast %cst_12 : f32 to vector<16x8x128xf32>
    %30 = arith.select %25, %28, %29 : vector<16x8x128xi1>, vector<16x8x128xf32>
    %cst_13 = arith.constant dense<0.000000e+00> : vector<16x128xf32>
    %31 = vector.multi_reduction <add>, %30, %cst_13 [1] : vector<16x8x128xf32> to vector<16x128xf32>
    %c0_14 = arith.constant 0 : index
    %c0_15 = arith.constant 0 : index
    %32 = vector.load %arg8[%c0_14, %c0_15] : memref<16x128xf32, #tpu.memory_space<vmem>>, vector<16x128xf32>
    %33 = arith.truncf %31 : vector<16x128xf32> to vector<16x128xbf16>
    %cst_16 = arith.constant dense<0.000000e+00> : vector<16x128xf32>
    %34 = tpu.matmul %33, %10, %cst_16 {dimension_numbers = #tpu.dot_dimension_numbers<[1], [0], [0], [1], [0, 0, 1, 1], [], []>} : vector<16x128xbf16>, vector<128x128xbf16>, vector<16x128xf32> -> vector<16x128xf32>
    %35 = arith.addf %32, %34 : vector<16x128xf32>
    %c0_17 = arith.constant 0 : index
    %c0_18 = arith.constant 0 : index
    %36 = vector.load %arg8[%c0_17, %c0_18] : memref<16x128xf32, #tpu.memory_space<vmem>>, vector<16x128xf32>
    tpu.vector_store %arg8[%c0_17, %c0_18], %35 {strides = array<i32>} : memref<16x128xf32, #tpu.memory_space<vmem>>, vector<16x128xf32>,
    %c1_i32 = arith.constant 1 : i32
    %37 = arith.cmpi eq, %arg2, %c1_i32 : i32
    %38 = arith.extui %37 : i1 to i32
    %c0_i32_19 = arith.constant 0 : i32
    %39 = arith.cmpi ne, %38, %c0_i32_19 : i32
    scf.if %39 {
      %c0_20 = arith.constant 0 : index
      %c0_21 = arith.constant 0 : index
      %40 = vector.load %arg8[%c0_20, %c0_21] : memref<16x128xf32, #tpu.memory_space<vmem>>, vector<16x128xf32>
      %c0_22 = arith.constant 0 : index
      %c0_23 = arith.constant 0 : index
      %41 = vector.load %arg7[%c0_22, %c0_23] : memref<16x128xf32, #tpu.memory_space<vmem>>, vector<16x128xf32>
      tpu.vector_store %arg7[%c0_22, %c0_23], %40 {strides = array<i32>} : memref<16x128xf32, #tpu.memory_space<vmem>>, vector<16x128xf32>,
    } else {
    }
    return
  }
  func.func @transform_0(%arg0: i32, %arg1: i32, %arg2: i32) -> (i32, i32, i32) {
    %c0_i32 = arith.constant 0 : i32
    %c0_i32_0 = arith.constant 0 : i32
    return %arg0, %arg1, %c0_i32 : i32, i32, i32
  }
  func.func @transform_1(%arg0: i32, %arg1: i32, %arg2: i32) -> (i32, i32, i32) {
    %c0_i32 = arith.constant 0 : i32
    %c0_i32_0 = arith.constant 0 : i32
    return %arg0, %arg1, %c0_i32 : i32, i32, i32
  }
  func.func @transform_2(%arg0: i32, %arg1: i32, %arg2: i32) -> (i32, i32, i32) {
    %c0_i32 = arith.constant 0 : i32
    %c0_i32_0 = arith.constant 0 : i32
    %c0_i32_1 = arith.constant 0 : i32
    return %arg0, %c0_i32, %c0_i32_0 : i32, i32, i32
  }
  func.func @transform_3(%arg0: i32, %arg1: i32, %arg2: i32) -> (i32, i32, i32) {
    %c0_i32 = arith.constant 0 : i32
    %c0_i32_0 = arith.constant 0 : i32
    return %arg0, %arg2, %c0_i32 : i32, i32, i32
  }
  func.func @transform_4(%arg0: i32, %arg1: i32, %arg2: i32) -> (i32, i32) {
    %c0_i32 = arith.constant 0 : i32
    return %arg1, %arg0 : i32, i32
  }
}

</mosaic_0001>

<bundles_post_ra>
// kernel: tpu_custom_call.1
= control target key start
LH: loop header
LB: loop body
LE: loop exit
PB: predicated region body
PF: predicated region fallthrough
CT: control target
= control target key end

     0   :  { %s1734_s0 = inlined_call_operand.vmem [shape: s32[2,32,8], index: 0, kind: input, shape index: {}]   ;;  %s1735_s1 = inlined_call_operand.vmem [shape: s32[2,32,1], index: 1, kind: input, shape index: {}]   ;;  %s1736_s2 = inlined_call_operand.vmem [shape: f32[2,1,8], index: 2, kind: input, shape index: {}]   ;;  %s1737_s3 = inlined_call_operand.hbm [shape: bf16[2,256,128], index: 3, kind: input, shape index: {}]   ;;  %s1738_s4 = inlined_call_operand.hbm [shape: f32[32,256], index: 4, kind: output, shape index: {}]  }
   0x1   :  { %1748 = sst [smem:[#allocation18_spill]] %s1737_s3 }
   0x2   :  { %1749 = sst [smem:[#allocation19_spill]] %s1738_s4 }
   0x3   :  { %9 = vsyncpa [#allocation4], 0 }
   0x4   :  { %11 = vsyncpa [#allocation4 + $0x1], 0 }
   0x5   :  { %12 = vsyncpa [#allocation5], 0 }
   0x6   :  { %14 = vsyncpa [#allocation5 + $0x1], 0  ;;  %s1432_s15 = smov 0   ;;  %s1434_s16 = smov 0  }
   0x7   :  { %s1436_s17 = smov 0   ;;  %s1438_s18 = smov 0  }
   0x8   :  { %s1440_s19 = smov 0   ;;  %s1442_s20 = smov 0  }
   0x9   :  { %s1444_s21 = smov 0   ;;  %s1446_s22 = smov 0  }
   0xa   :  { %s1448_s23 = smov 0   ;;  %s1450_s24 = smov 0  }
   0xb   :  { %s1452_s25 = smov 0   ;;  %s1454_s26 = smov 0  }
   0xc   :  { %s1456_s27 = smov 0  }
   0xd LB: > { %1750 = sst [smem:[#allocation9_spill]] %s1350_s15  ;;  %s1033_s28 = sadd.s32 4294967295, %s1398_s27   ;;  %s1398_s27 = sphi %s1456_s27, %s20_s27   ;;  %s1394_s26 = sphi %s1454_s26, %s1785_s26   ;;  %s1390_s25 = sphi %s1452_s25, %s1775_s25   ;;  %s1386_s24 = sphi %s1450_s24, %s1784_s24   ;;  %s1382_s23 = sphi %s1448_s23, %s1783_s23   ;;  %s1378_s22 = sphi %s1446_s22, %s1773_s22   ;;  %s1374_s21 = sphi %s1444_s21, %s1782_s21   ;;  %s1370_s20 = sphi %s1442_s20, %s1772_s20   ;;  %s1366_s19 = sphi %s1440_s19, %s1781_s19   ;;  %s1362_s18 = sphi %s1438_s18, %s1780_s18   ;;  %s1358_s17 = sphi %s1436_s17, %s1779_s17   ;;  %s1354_s16 = sphi %s1434_s16, %s1778_s16   ;;  %s1350_s15 = sphi %s1432_s15, %s1777_s15  }
   0xe   : > { %1751 = sst [smem:[#allocation10_spill]] %s1370_s20  ;;  %s1034_s29 = sadd.s32 4294967294, %s1398_s27  }
   0xf   : > { %1752 = sst [smem:[#allocation11_spill]] %s1374_s21  ;;  %s32_s30 = sadd.s32 1, %s1386_s24 }
  0x10   : > { %1753 = sst [smem:[#allocation12_spill]] %s1390_s25  ;;  %s35_s5 = sadd.s32 1, %s1390_s25 }
  0x11   : > { %p33_p0 = scmp.ge.s32.totalorder %s32_s30, 2  ;;  %s39_s6 = sadd.s32 1, %s1394_s26 }
  0x12   : > { %s130_s7 = sadd.s32 1, %s1370_s20  ;;  %p137_p1 = scmp.ne.s32.totalorder %s1370_s20, %s1366_s19 }
  0x13   : > { %s1787_s30 = smov (%p33_p0, %s32_s30), 0  ;;  %s1789_s5 = smov (!%p33_p0, %s35_s5), %s1390_s25 }
  0x14   : > { %1754 = sst [smem:[#allocation13_spill]] %s1787_s30  ;;  %s126_s8 = ssub.s32 %s1386_s24, %s1787_s30 }
  0x15   : > { %p138_p2 = scmp.eq.s32.totalorder %s1398_s27, 0  ;;  %p37_p3 = scmp.ge.s32.totalorder %s1789_s5, 2 }
  0x16   : > { %p143_p4 = scmp.ne.s32.totalorder %s1366_s19, %s1362_s18  ;;  %p144_p6 = scmp.eq.s32.totalorder %s1033_s28, 0 }
  0x17   : > { %p1510_p5 = por %p138_p2, %p137_p1  ;;  %s1791_s5 = smov (%p37_p3, %s1789_s5), 0 }
  0x18   : > { %1756 = sst [smem:[#allocation14_spill]] %s1791_s5  ;;  %s1793_s6 = smov (!%p37_p3, %s39_s6), %s1394_s26 }
  0x19   : > { %p1517_p7 = por %p144_p6, %p143_p4  ;;  %s153_s11 = ssub.s32 %s1390_s25, %s1791_s5 }
  0x1a   : > { %p41_p8 = scmp.ge.s32.totalorder %s1793_s6, 2  ;;  %s158_s12 = sadd.s32 1, %s1358_s17 }
  0x1b   : > { %p168_p9 = scmp.ne.s32.totalorder %s1358_s17, %s1354_s16  ;;  %p169_p10 = scmp.eq.s32.totalorder %s1033_s28, 7 }
  0x1c   : > { %s1795_s6 = smov (%p41_p8, %s1793_s6), 0  ;;  %p174_p12 = scmp.ne.s32.totalorder %s1354_s16, %s1350_s15 }
  0x1d   : > { %1758 = sst [smem:[#allocation15_spill]] %s1795_s6  ;;  %p1528_p11 = por %p169_p10, %p168_p9 }
  0x1e   : > { %s125_s14 = ssub.s32 %s1394_s26, %s1795_s6  ;;  %p175_p13 = scmp.eq.s32.totalorder %s1034_s29, 7 }
  0x1f   : > { %s127_s18 = sor.u32 %s126_s8, %s125_s14  ;;  %s155_s5 = sor.u32 %s153_s11, %s125_s14 }
  0x20   : > { %p128_p0 = scmp.eq.s32.totalorder %s127_s18, 0  ;;  %p156_p1 = scmp.eq.s32.totalorder %s155_s5, 0 }
  0x21   : > { %p1536_p2 = por %p175_p13, %p174_p12  ;;  %p1112_p3 = scmp.lt.s32.totalorder %s1398_s27, 8 }
  0x22   : > { %s1541_s28 = scalar_select %p128_p0, %s1370_s20, %s130_s7  }
  0x23   : > { %s1544_s25 = scalar_select %p156_p1, %s1358_s17, %s158_s12  }
  0x24   : > { %1761 = sst [smem:[#allocation16_spill]] %s1541_s28  ;;  %s227_s4 = sand.u32 1, %s1370_s20  }
  0x25   : > { %1762 = sst [smem:[#allocation17_spill]] %s1544_s25  ;;  %s1037_s21 = sshll.u32 %s227_s4, 6 }
  0x26   : > { %s1038_s15 = sshll.u32 %s1386_s24, 4  ;;  %s1039_s29 = sshll.u32 %s1394_s26, 5 }
  0x27   : > { %s231_s8 = scalar_lea.vmem [#allocation3], %s1037_s21  ;;  %s236_s14 = sadd.s32 %s1039_s29, %s1038_s15 }
  0x28   : > { %s241_s11 = sshll.u32 %s231_s8, 4  ;;  %s1040_s5 = sshll.u32 %s236_s14, 2  ;;  %s242_s11 = int_to_ptr.vmem [resolvable:$true] %s241_s11 }
  0x29   : > { %p1105_p4 = pnand %p1112_p3, %p1510_p5  ;;  %s1763_s3 = sld [smem:[#allocation18_spill]] }
  0x2a   : > { %s228_s28 = scalar_lea.sflag [#allocation4], %s227_s4  ;;  %s1400_s20 = smov 64  }
  0x2b   : > { %s1401_s25 = smov 4   ;;  %p1041_p6 = scmp.ge.s32.totalorder %s1398_s27, 1 }
  0x2c   : > { %p249_p8 = scmp.lt.s32.totalorder %s1398_s27, 9 }
  0x2e   : > { %p250_p9 = pnand %p1041_p6, %p249_p8 }
  0x2f   : > { %s238_s7 = scalar_lea.hbm %s1763_s3, %s1040_s5  ;;  %s255_s15 = sand.u32 (!%p250_p9), 1, %s1366_s19  }
  0x30   : > { %s239_s12 = sshll.u32 %s238_s7, 4  ;;  %253 = sbr.rel (%p250_p9) target bundleno = 539 (0x21b), region = 36  ;;  %s240_s12 = int_to_ptr.hbm [resolvable:$true] %s239_s12 }
  0x31   : > { %1107 = dma.hbm_to_vmem [thread:$0]  (!%p1105_p4), %s240_s12, 1024, %s242_s11, %s228_s28, %s1400_s20, %s1400_s20, %s1401_s25  }
  0x32   : > { %s1042_s21 = sshll.u32 (!%p250_p9), %s255_s15, 6  ;;  %s256_s9 = scalar_lea.sflag (!%p250_p9), [#allocation4], %s255_s15 }
  0x33   : > { %s1558_s29 = scalar_lea.vmem (!%p250_p9), [#allocation3], %s1042_s21 }
  0x35   : > { %1341 = dma.done.wait (%p1517_p7), %s256_s9, 1024  }
  0x36   : > { %1343 = vsyncadd (%p1517_p7), %s256_s9, 4294966272  ;;  %s1747_s4 = sand.u32 1, %s1354_s16   ;;  %s1044_s20 = sshll.u32 %s1378_s22, 1 }
  0x37   : > { %s1043_s25 = sshll.u32 %s1747_s4, 4  ;;  %p307_p5 = scmp.lt.s32.totalorder %s1382_s23, 1 }
  0x38   : > { %p309_p10 = scmp.lt.s32.totalorder %s1044_s20, 3  ;;  %s1583_s4 = scalar_lea.vmem [#allocation6], %s1043_s25 }
  0x39   : > { %s1570_s6 = scalar_select %p307_p5, %s1382_s23, 1 }
  0x3a   : > { %s1797_s20 = smov (!%p309_p10, %s1044_s20), 3  ;;  %s1764_s3 = sld [smem:[#allocation11_spill]] }
  0x3b   : > { %s1045_s28 = sshll.u32 %s1570_s6, 2  ;;  %s328_s11 = scalar_lea.vmem %s1736_s2, %s1570_s6 }
  0x3c   : > { %s312_s14 = sadd.s32 %s1045_s28, %s1797_s20 }
  0x3d   : > { %s1046_s5 = sshll.u32 %s312_s14, 3 }
  0x3e   : > { %s314_s12 = scalar_lea.vmem %s1734_s0, %s1046_s5  ;;  %s324_s9 = scalar_lea.vmem %s1735_s1, %s1046_s5 }
  0x40   : > { %p1050_p7 = scmp.ne.s32.totalorder %s1764_s3, 0 }
  0x42   : > { %334 = sbr.rel (%p1050_p7) target bundleno = 74 (0x4a), region = 44 }
  0x47   : > { %v1402_v0 = vmov 0.0  }
  0x48   : > { %335 = vst [vmem:[#allocation2] sm:$0xff] %v1402_v0 }
  0x49   : > { %336 = vst [vmem:[#allocation2 + $0x8] sm:$0xff] %v1402_v0 }
  0x4a PF: > { %v339_v1 = vld [vmem:[%s324_s9] sm:$0xff]  ;;  %v358_v2 = vlaneseq  ;;  %v1403_v3 = vmov 0   ;;  %v340_v6 = vld [vmem:[%s324_s9 + $0x8] sm:$0xff]  ;;  %s1765_s25 = sld [smem:[#allocation11_spill]]  ;;  %vm778_vm9 = vcmask 1041409   ;;  %vm780_vm15 = vcmask 1042434  }
  0x4b   : > { %1225 = vset.pattern.permute.xlu0 %v1403_v3  ;;  %v337_v5 = vld [vmem:[%s314_s12] sm:$0xff]  ;;  %v338_v7 = vld [vmem:[%s314_s12 + $0x8] sm:$0xff] }
  0x4c   : > { %361 = vperm.xlu0 %1225, %v339_v1   ;;  %v378_v4 = vshrl.u32 %v358_v2, 7  ;;  %v376_v8 = vperm.slane %v337_v5, 0  ;;  %v432_v9 = vperm.slane %v338_v7, 0  ;;  %v383_v10 = vperm.slane %v337_v5, 1  ;;  %v1229_v25 = vld [vmem:[%s328_s11] ss:$0 sm:$0xff] }
  0x4d   : > { %v439_v11 = vperm.slane %v338_v7, 1  ;;  %v390_v12 = vperm.slane %v337_v5, 2  ;;  %v446_v13 = vperm.slane %v338_v7, 2  ;;  %v453_v14 = vperm.slane %v338_v7, 3 }
  0x4e   : > { %1226 = vset.pattern.permute.xlu1 %v378_v4  ;;  %1227 = vset.pattern.permute.xlu2 %v378_v4  ;;  %v460_v15 = vperm.slane %v338_v7, 4  ;;  %v397_v16 = vperm.slane %v337_v5, 3  ;;  %v404_v17 = vperm.slane %v337_v5, 4  ;;  %v411_v18 = vperm.slane %v337_v5, 5 }
  0x4f   : > { %v467_v19 = vperm.slane %v338_v7, 5  ;;  %v474_v20 = vperm.slane %v338_v7, 6  ;;  %v481_v21 = vperm.slane %v338_v7, 7  ;;  %v418_v22 = vperm.slane %v337_v5, 6 }
  0x50   : > { %v425_v23 = vperm.slane %v337_v5, 7  ;;  %v359_v24 = vand.u32 127, %v358_v2  ;;  %s1051_s6 = sshll.u32 %s1765_s25, 7  ;;  %p1084_p12 = scmp.ne.s32.totalorder %s1765_s25, 1 }
  0x51   : > { %v374_v57 = vstv %s1051_s6 }
  0x52   : > { %v1604_v58 = vadd.s32 %v374_v57, %v359_v24 }
  0x54   : > { %364 = vperm.xlu0 %1225, %v340_v6  }
  0x56   : > { %381 = vperm.xlu1 %1226, %v376_v8   ;;  %437 = vperm.xlu2 %1227, %v432_v9   ;;  %v1098_v8 = vld [vmem:[%s1558_s29 + $0x38] sm:$0xff] }
  0x57   : > { %849 = vmatpush.bf16.msra.mxu0 %v1098_v8 }
  0x5c   : > { %1228 = vset.pattern.permute.xlu0 %v378_v4 }
  0x5e   : > { %388 = vperm.xlu1 %1226, %v383_v10   ;;  %444 = vperm.xlu2 %1227, %v439_v11  }
  0x64   : > { %395 = vperm.xlu0 %1228, %v390_v12  }
  0x66   : > { %451 = vperm.xlu1 %1226, %v446_v13   ;;  %458 = vperm.xlu2 %1227, %v453_v14  }
  0x6c   : > { %465 = vperm.xlu0 %1228, %v460_v15  }
  0x6e   : > { %402 = vperm.xlu1 %1226, %v397_v16   ;;  %409 = vperm.xlu2 %1227, %v404_v17   ;;  %v1097_v16 = vld [vmem:[%s1558_s29 + $0x30] sm:$0xff] }
  0x6f   : > { %850 = vmatpush.bf16.msra.mxu0 %v1097_v16 }
  0x74   : > { %416 = vperm.xlu0 %1228, %v411_v18  }
  0x76   : > { %472 = vperm.xlu1 %1226, %v467_v19   ;;  %479 = vperm.xlu2 %1227, %v474_v20  }
  0x7c   : > { %486 = vperm.xlu0 %1228, %v481_v21   ;;  %v1096_v21 = vld [vmem:[%s1558_s29 + $0x28] sm:$0xff] }
  0x7d   : > { %851 = vmatpush.bf16.msra.mxu0 %v1096_v21 }
  0x7e   : > { %423 = vperm.xlu1 %1226, %v418_v22   ;;  %430 = vperm.xlu2 %1227, %v425_v23  }
  0xb0   : > { %v438_v44 = vpop.permute.xlu2 %437 }
  0xb1   : > { %vm496_vm3 = vcmp.eq.s32.totalorder %v438_v44, %v1604_v58 }
  0xb8   : > { %v445_v47 = vpop.permute.xlu2 %444 }
  0xb9   : > { %vm497_vm5 = vcmp.eq.s32.totalorder %v445_v47, %v1604_v58 }
  0xbe   : > { %v362_v26 = vpop.permute.xlu0 %361 }
  0xbf   : > { %vm366_vm0 = vcmp.lt.s32.totalorder %v359_v24, %v362_v26 }
  0xc0   : > { %v371_v27 = vsel %vm366_vm0, %v1229_v25, 0.0  ;;  %v1591_v49 = vpop.permute.xlu2 %458 }
  0xc1   : > { %v504_v28 = vperm.slane %v371_v27, 0  ;;  %v511_v29 = vperm.slane %v371_v27, 1  ;;  %v518_v36 = vperm.slane %v371_v27, 2  ;;  %v525_v37 = vperm.slane %v371_v27, 3 }
  0xc2   : > { %v532_v38 = vperm.slane %v371_v27, 4  ;;  %v539_v42 = vperm.slane %v371_v27, 5  ;;  %v546_v43 = vperm.slane %v371_v27, 6  ;;  %v553_v45 = vperm.slane %v371_v27, 7 }
  0xc3   : > { %509 = vperm.xlu2 %1227, %v504_v28   ;;  %516 = vperm.xlu1 %1226, %v511_v29   ;;  %vm499_vm7 = vcmp.eq.s32.totalorder %v1591_v49, %v1604_v58 }
  0xc6   : > { %v365_v30 = vpop.permute.xlu0 %364 }
  0xc7   : > { %vm367_vm1 = vcmp.lt.s32.totalorder %v359_v24, %v365_v30 }
  0xc8   : > { %v372_v31 = vsel %vm367_vm1, %v1229_v25, 0.0  ;;  %v382_v48 = vpop.permute.xlu1 %381  ;;  %v1593_v51 = vpop.permute.xlu2 %409 }
  0xc9   : > { %v560_v32 = vperm.slane %v372_v31, 0  ;;  %v567_v33 = vperm.slane %v372_v31, 1  ;;  %v574_v34 = vperm.slane %v372_v31, 2  ;;  %v581_v35 = vperm.slane %v372_v31, 3 }
  0xca   : > { %v588_v39 = vperm.slane %v372_v31, 4  ;;  %v595_v40 = vperm.slane %v372_v31, 5  ;;  %v602_v41 = vperm.slane %v372_v31, 6  ;;  %v609_v46 = vperm.slane %v372_v31, 7  ;;  %v1095_v31 = vld [vmem:[%s1558_s29 + $0x20] sm:$0xff] }
  0xcb   : > { %565 = vperm.xlu2 %1227, %v560_v32   ;;  %572 = vperm.xlu0 %1228, %v567_v33   ;;  %vm488_vm2 = vcmp.eq.s32.totalorder %v382_v48, %v1604_v58  ;;  %vm492_vm11 = vcmp.eq.s32.totalorder %v1593_v51, %v1604_v58 }
  0xcc   : > { %579 = vperm.xlu1 %1226, %v574_v34   ;;  %852 = vmatpush.bf16.msra.mxu0 %v1095_v31 }
  0xd0   : > { %v389_v50 = vpop.permute.xlu1 %388  ;;  %v1595_v53 = vpop.permute.xlu2 %479 }
  0xd1   : > { %vm489_vm4 = vcmp.eq.s32.totalorder %v389_v50, %v1604_v58  ;;  %vm502_vm12 = vcmp.eq.s32.totalorder %v1595_v53, %v1604_v58  ;;  %v1091_v53 = vld [vmem:[%s1558_s29] sm:$0xff] }
  0xd3   : > { %586 = vperm.xlu2 %1227, %v581_v35   ;;  %523 = vperm.xlu0 %1228, %v518_v36  }
  0xd4   : > { %530 = vperm.xlu1 %1226, %v525_v37  }
  0xd6   : > { %v1597_v54 = vpop.permute.xlu0 %395 }
  0xd7   : > { %vm490_vm8 = vcmp.eq.s32.totalorder %v1597_v54, %v1604_v58 }
  0xd8   : > { %v452_v52 = vpop.permute.xlu1 %451  ;;  %v1601_v56 = vpop.permute.xlu2 %430 }
  0xd9   : > { %vm498_vm6 = vcmp.eq.s32.totalorder %v452_v52, %v1604_v58 }
  0xdb   : > { %537 = vperm.xlu2 %1227, %v532_v38   ;;  %593 = vperm.xlu0 %1228, %v588_v39  }
  0xdc   : > { %600 = vperm.xlu1 %1226, %v595_v40  }
  0xde   : > { %v1606_v59 = vpop.permute.xlu0 %465 }
  0xdf   : > { %vm500_vm13 = vcmp.eq.s32.totalorder %v1606_v59, %v1604_v58 }
  0xe0   : > { %v1599_v55 = vpop.permute.xlu1 %402 }
  0xe1   : > { %vm491_vm10 = vcmp.eq.s32.totalorder %v1599_v55, %v1604_v58 }
  0xe3   : > { %607 = vperm.xlu2 %1227, %v602_v41   ;;  %544 = vperm.xlu0 %1228, %v539_v42   ;;  %v1094_v41 = vld [vmem:[%s1558_s29 + $0x18] sm:$0xff] }
  0xe4   : > { %551 = vperm.xlu1 %1226, %v546_v43   ;;  %853 = vmatpush.bf16.msra.mxu0 %v1094_v41 }
  0xe6   : > { %v1611_v0 = vpop.permute.xlu0 %416 }
  0xe7   : > { %vm493_vm0 = vcmp.eq.s32.totalorder %v1611_v0, %v1604_v58 }
  0xe8   : > { %v1608_v61 = vpop.permute.xlu1 %472 }
  0xe9   : > { %vm501_vm14 = vcmp.eq.s32.totalorder %v1608_v61, %v1604_v58 }
  0xeb   : > { %558 = vperm.xlu0 %1228, %v553_v45  }
  0xec   : > { %614 = vperm.xlu1 %1226, %v609_v46  }
  0xee   : > { %v1618_v9 = vpop.permute.xlu0 %486 }
  0xf0   : > { %v1614_v3 = vpop.permute.xlu1 %423 }
  0xf1   : > { %vm494_vm1 = vcmp.eq.s32.totalorder %v1614_v3, %v1604_v58 }
 0x11d   : > { %v510_v60 = vpop.permute.xlu2 %509 }
 0x11e   : > { %v616_v62 = vsel %vm488_vm2, %v510_v60, 0.0  ;;  %vm495_vm2 = vcmp.eq.s32.totalorder %v1601_v56, %v1604_v58 }
 0x11f   : > { %v632_v63 = vrot.slane %v616_v62, 4 }
 0x121   : > { %v633_v2 = vadd.f32 %v632_v63, %v616_v62 }
 0x123   : > { %v634_v5 = vrot.slane %v633_v2, 2 }
 0x125   : > { %v566_v1 = vpop.permute.xlu2 %565  ;;  %v635_v7 = vadd.f32 %v634_v5, %v633_v2 }
 0x126   : > { %v624_v4 = vsel %vm496_vm3, %v566_v1, 0.0  ;;  %v1093_v1 = vld [vmem:[%s1558_s29 + $0x10] sm:$0xff]  ;;  %vm503_vm3 = vcmp.eq.s32.totalorder %v1618_v9, %v1604_v58 }
 0x127   : > { %v680_v6 = vrot.slane %v624_v4, 4  ;;  %v636_v15 = vrot.slane %v635_v7, 1  ;;  %854 = vmatpush.bf16.msra.mxu0 %v1093_v1 }
 0x129   : > { %v681_v10 = vadd.f32 %v680_v6, %v624_v4  ;;  %v637_v20 = vadd.f32 %v636_v15, %v635_v7 }
 0x12b   : > { %v682_v17 = vrot.slane %v681_v10, 2  ;;  %v730_v29 = vpack.c.bf16 %v637_v20, %v637_v20 }
 0x12d   : > { %v587_v13 = vpop.permute.xlu2 %586  ;;  %v683_v22 = vadd.f32 %v682_v17, %v681_v10  ;;  %v762_v39 = vunpack.c.l.b16 %v730_v29 }
 0x12e   : > { %v627_v43 = vsel %vm499_vm7, %v587_v13, 0.0  ;;  %v1092_v13 = vld [vmem:[%s1558_s29 + $0x8] sm:$0xff]  ;;  %vm788_vm7 = vcmask 1046534  }
 0x12f   : > { %v684_v32 = vrot.slane %v683_v22, 1  ;;  %v698_v60 = vrot.slane %v627_v43, 4  ;;  %855 = vmatpush.bf16.msra.mxu0 %v1092_v13 }
 0x131   : > { %v685_v42 = vadd.f32 %v684_v32, %v683_v22  ;;  %v699_v15 = vadd.f32 %v698_v60, %v627_v43 }
 0x133   : > { %v738_v2 = vpack.c.bf16 %v685_v42, %v685_v42  ;;  %v700_v31 = vrot.slane %v699_v15, 2  ;;  %856 = vmatpush.bf16.msra.mxu0 %v1091_v53 }
 0x135   : > { %v517_v11 = vpop.permute.xlu1 %516  ;;  %v538_v33 = vpop.permute.xlu2 %537  ;;  %v701_v41 = vadd.f32 %v700_v31, %v699_v15 }
 0x136   : > { %v617_v12 = vsel %vm489_vm4, %v517_v11, 0.0  ;;  %v620_v50 = vsel %vm492_vm11, %v538_v33, 0.0  ;;  %vm782_vm4 = vcmask 1043459  }
 0x137   : > { %v638_v14 = vrot.slane %v617_v12, 4  ;;  %v656_v51 = vrot.slane %v620_v50, 4  ;;  %v702_v0 = vrot.slane %v701_v41, 1 }
 0x139   : > { %v639_v18 = vadd.f32 %v638_v14, %v617_v12  ;;  %v770_v14 = vunpack.c.l.b16 %v738_v2 }
 0x13b   : > { %v640_v19 = vrot.slane %v639_v18, 2 }
 0x13d   : > { %v641_v23 = vadd.f32 %v640_v19, %v639_v18  ;;  %v573_v24 = vpop.permute.xlu0 %572  ;;  %v608_v7 = vpop.permute.xlu2 %607  ;;  %v657_v18 = vadd.f32 %v656_v51, %v620_v50 }
 0x13e   : > { %v625_v25 = vsel %vm497_vm5, %v573_v24, 0.0  ;;  %v580_v26 = vpop.permute.xlu1 %579  ;;  %v630_v19 = vsel %vm502_vm12, %v608_v7, 0.0  ;;  %v703_v7 = vadd.f32 %v702_v0, %v701_v41  ;;  %vm784_vm5 = vcmask 1044484  }
 0x13f   : > { %v642_v27 = vrot.slane %v641_v23, 1  ;;  %v686_v28 = vrot.slane %v625_v25, 4  ;;  %v626_v30 = vsel %vm498_vm6, %v580_v26, 0.0  ;;  %v658_v32 = vrot.slane %v657_v18, 2 }
 0x140   : > { %v692_v36 = vrot.slane %v626_v30, 4  ;;  %vm786_vm6 = vcmask 1045509  }
 0x141   : > { %v643_v34 = vadd.f32 %v642_v27, %v641_v23  ;;  %v687_v35 = vadd.f32 %v686_v28, %v625_v25  ;;  %v716_v28 = vrot.slane %v630_v19, 4  ;;  %v659_v42 = vadd.f32 %v658_v32, %v657_v18 }
 0x142   : > { %v693_v40 = vadd.f32 %v692_v36, %v626_v30 }
 0x143   : > { %v731_v37 = vpack.c.bf16 %v643_v34, %v643_v34  ;;  %v688_v38 = vrot.slane %v687_v35, 2  ;;  %v660_v60 = vrot.slane %v659_v42, 1 }
 0x144   : > { %v694_v47 = vrot.slane %v693_v40, 2 }
 0x145   : > { %v763_v44 = vunpack.c.l.b16 %v731_v37  ;;  %v689_v45 = vadd.f32 %v688_v38, %v687_v35  ;;  %v524_v46 = vpop.permute.xlu0 %523  ;;  %v717_v38 = vadd.f32 %v716_v28, %v630_v19 }
 0x146   : > { %v618_v48 = vsel %vm490_vm8, %v524_v46, 0.0  ;;  %v531_v49 = vpop.permute.xlu1 %530  ;;  %v695_v62 = vadd.f32 %v694_v47, %v693_v40  ;;  %vm790_vm8 = vcmask 1047559  }
 0x147   : > { %v1635_v52 = vsel %vm778_vm9, %v763_v44, %v762_v39  ;;  %v690_v54 = vrot.slane %v689_v45, 1  ;;  %v644_v57 = vrot.slane %v618_v48, 4  ;;  %v619_v63 = vsel %vm491_vm10, %v531_v49, 0.0 }
 0x148   : > { %v650_v5 = vrot.slane %v619_v63, 4  ;;  %v696_v6 = vrot.slane %v695_v62, 1  ;;  %v718_v50 = vrot.slane %v717_v38, 2 }
 0x149   : > { %v691_v55 = vadd.f32 %v690_v54, %v689_v45  ;;  %v645_v4 = vadd.f32 %v644_v57, %v618_v48 }
 0x14a   : > { %v651_v10 = vadd.f32 %v650_v5, %v619_v63  ;;  %v697_v11 = vadd.f32 %v696_v6, %v695_v62  ;;  %v719_v3 = vadd.f32 %v718_v50, %v717_v38 }
 0x14b   : > { %v739_v8 = vpack.c.bf16 %v691_v55, %v691_v55  ;;  %v646_v12 = vrot.slane %v645_v4, 2 }
 0x14c   : > { %v740_v20 = vpack.c.bf16 %v697_v11, %v697_v11  ;;  %v652_v59 = vrot.slane %v651_v10, 2 }
 0x14d   : > { %v771_v16 = vunpack.c.l.b16 %v739_v8  ;;  %v594_v17 = vpop.permute.xlu0 %593  ;;  %v647_v26 = vadd.f32 %v646_v12, %v645_v4  ;;  %v661_v8 = vadd.f32 %v660_v60, %v659_v42 }
 0x14e   : > { %v628_v21 = vsel %vm500_vm13, %v594_v17, 0.0  ;;  %v601_v22 = vpop.permute.xlu1 %600  ;;  %v772_v25 = vunpack.c.l.b16 %v740_v20  ;;  %v653_v34 = vadd.f32 %v652_v59, %v651_v10  ;;  %v720_v20 = vrot.slane %v719_v3, 1 }
 0x14f   : > { %v792_v23 = vsel %vm778_vm9, %v771_v16, %v770_v14  ;;  %v704_v24 = vrot.slane %v628_v21, 4  ;;  %v629_v27 = vsel %vm501_vm14, %v601_v22, 0.0  ;;  %v648_v37 = vrot.slane %v647_v26, 1 }
 0x150   : > { %v710_v30 = vrot.slane %v629_v27, 4  ;;  %v1651_v33 = vsel %vm780_vm15, %v772_v25, %v792_v23  ;;  %v654_v45 = vrot.slane %v653_v34, 1  ;;  %v741_v22 = vpack.c.bf16 %v703_v7, %v703_v7 }
 0x151   : > { %v705_v29 = vadd.f32 %v704_v24, %v628_v21  ;;  %v649_v46 = vadd.f32 %v648_v37, %v647_v26  ;;  %v734_v59 = vpack.c.bf16 %v661_v8, %v661_v8  ;;  %v721_v31 = vadd.f32 %v720_v20, %v719_v3 }
 0x152   : > { %v711_v36 = vadd.f32 %v710_v30, %v629_v27  ;;  %v655_v63 = vadd.f32 %v654_v45, %v653_v34 }
 0x153   : > { %v706_v35 = vrot.slane %v705_v29, 2  ;;  %v732_v2 = vpack.c.bf16 %v649_v46, %v649_v46 }
 0x154   : > { %v712_v61 = vrot.slane %v711_v36, 2  ;;  %v733_v13 = vpack.c.bf16 %v655_v63, %v655_v63 }
 0x155   : > { %v707_v39 = vadd.f32 %v706_v35, %v705_v29  ;;  %v545_v40 = vpop.permute.xlu0 %544  ;;  %v764_v56 = vunpack.c.l.b16 %v732_v2  ;;  %v773_v35 = vunpack.c.l.b16 %v741_v22 }
 0x156   : > { %v621_v43 = vsel %vm493_vm0, %v545_v40, 0.0  ;;  %v552_v44 = vpop.permute.xlu1 %551  ;;  %v713_v47 = vadd.f32 %v712_v61, %v711_v36  ;;  %v765_v24 = vunpack.c.l.b16 %v733_v13  ;;  %v766_v40 = vunpack.c.l.b16 %v734_v59 }
 0x157   : > { %v662_v48 = vrot.slane %v621_v43, 4  ;;  %v622_v49 = vsel %vm494_vm1, %v552_v44, 0.0  ;;  %v708_v54 = vrot.slane %v707_v39, 1  ;;  %v781_v27 = vsel %vm780_vm15, %v764_v56, %v1635_v52 }
 0x158   : > { %v668_v57 = vrot.slane %v622_v49, 4  ;;  %v714_v55 = vrot.slane %v713_v47, 1  ;;  %v783_v38 = vsel %vm782_vm4, %v765_v24, %v781_v27  ;;  %v744_v52 = vpack.c.bf16 %v721_v31, %v721_v31 }
 0x159   : > { %v663_v62 = vadd.f32 %v662_v48, %v621_v43  ;;  %v709_v5 = vadd.f32 %v708_v54, %v707_v39  ;;  %v794_v43 = vsel %vm782_vm4, %v773_v35, %v1651_v33  ;;  %v785_v48 = vsel %vm784_vm5, %v766_v40, %v783_v38 }
 0x15a   : > { %v669_v1 = vadd.f32 %v668_v57, %v622_v49  ;;  %v715_v17 = vadd.f32 %v714_v55, %v713_v47  ;;  %v776_v0 = vunpack.c.l.b16 %v744_v52 }
 0x15b   : > { %v664_v4 = vrot.slane %v663_v62, 2  ;;  %v742_v21 = vpack.c.bf16 %v709_v5, %v709_v5 }
 0x15c   : > { %v670_v51 = vrot.slane %v669_v1, 2  ;;  %v743_v28 = vpack.c.bf16 %v715_v17, %v715_v17 }
 0x15d   : > { %v559_v6 = vpop.permute.xlu0 %558  ;;  %v665_v10 = vadd.f32 %v664_v4, %v663_v62  ;;  %v774_v32 = vunpack.c.l.b16 %v742_v21  ;;  %v728_v4 = vld [vmem:[#allocation2] sm:$0xff] }
 0x15e   : > { %v623_v11 = vsel %vm495_vm2, %v559_v6, 0.0  ;;  %v615_v12 = vpop.permute.xlu1 %614  ;;  %v671_v14 = vadd.f32 %v670_v51, %v669_v1  ;;  %v775_v41 = vunpack.c.l.b16 %v743_v28  ;;  %v729_v51 = vld [vmem:[#allocation2 + $0x8] sm:$0xff] }
 0x15f   : > { %v674_v15 = vrot.slane %v623_v11, 4  ;;  %v631_v16 = vsel %vm503_vm3, %v615_v12, 0.0  ;;  %v666_v18 = vrot.slane %v665_v10, 1  ;;  %v795_v45 = vsel %vm784_vm5, %v774_v32, %v794_v43 }
 0x160   : > { %v722_v19 = vrot.slane %v631_v16, 4  ;;  %v672_v58 = vrot.slane %v671_v14, 1  ;;  %v796_v57 = vsel %vm786_vm6, %v775_v41, %v795_v45 }
 0x161   : > { %v675_v9 = vadd.f32 %v674_v15, %v623_v11  ;;  %v667_v53 = vadd.f32 %v666_v18, %v665_v10  ;;  %v797_v2 = vsel %vm788_vm7, %v776_v0, %v796_v57 }
 0x162   : > { %v723_v23 = vadd.f32 %v722_v19, %v631_v16  ;;  %v673_v25 = vadd.f32 %v672_v58, %v671_v14 }
 0x163   : > { %v676_v26 = vrot.slane %v675_v9, 2  ;;  %v735_v29 = vpack.c.bf16 %v667_v53, %v667_v53 }
 0x164   : > { %v724_v30 = vrot.slane %v723_v23, 2  ;;  %v736_v36 = vpack.c.bf16 %v673_v25, %v673_v25 }
 0x165   : > { %v677_v34 = vadd.f32 %v676_v26, %v675_v9  ;;  %v767_v39 = vunpack.c.l.b16 %v735_v29 }
 0x166   : > { %v725_v37 = vadd.f32 %v724_v30, %v723_v23  ;;  %v768_v46 = vunpack.c.l.b16 %v736_v36 }
 0x167   : > { %v678_v61 = vrot.slane %v677_v34, 1  ;;  %v787_v50 = vsel %vm786_vm6, %v767_v39, %v785_v48 }
 0x168   : > { %v726_v42 = vrot.slane %v725_v37, 1  ;;  %v789_v63 = vsel %vm788_vm7, %v768_v46, %v787_v50 }
 0x169   : > { %v679_v44 = vadd.f32 %v678_v61, %v677_v34 }
 0x16a   : > { %v727_v47 = vadd.f32 %v726_v42, %v725_v37 }
 0x16b   : > { %v737_v49 = vpack.c.bf16 %v679_v44, %v679_v44 }
 0x16c   : > { %v745_v54 = vpack.c.bf16 %v727_v47, %v727_v47 }
 0x16d   : > { %v769_v60 = vunpack.c.l.b16 %v737_v49 }
 0x16e   : > { %v777_v62 = vunpack.c.l.b16 %v745_v54 }
 0x16f   : > { %v791_v1 = vsel %vm790_vm8, %v769_v60, %v789_v63 }
 0x170   : > { %v798_v33 = vsel %vm790_vm8, %v777_v62, %v797_v2 }
 0x171   : > { %v799_v55 = vpack.c.b16 %v798_v33, %v791_v1 }
 0x173   : > { %857 = vmatmul.bf16.vlgmr.msra.gmra.mxu0 %v799_v55 }
 0x1f0   : > { %v858_v3 = vpop.f32.mrf.mxu0 }
 0x1f1   : > { %v863_v5 = vadd.f32 %v858_v3, %v728_v4 }
 0x1f3   : > { %865 = vst [vmem:[#allocation2] sm:$0xff] %v863_v5 }
 0x1f7   : > { %870 = sbr.rel (%p1084_p12) target bundleno = 516 (0x204), region = 48 }
 0x1f8   : > { %v860_v6 = vpop.f32.mrf.mxu0 }
 0x1f9   : > { %v864_v7 = vadd.f32 %v860_v6, %v729_v51 }
 0x1fb   : > { %866 = vst [vmem:[#allocation2 + $0x8] sm:$0xff] %v864_v7 }
 0x1fc   : > { %v871_v8 = vld [vmem:[#allocation2] sm:$0xff] }
 0x1fd   : > { %873 = vst [vmem:[%s1583_s4] sm:$0xff] %v871_v8 }
 0x202   : > { %v872_v10 = vld [vmem:[#allocation2 + $0x8] sm:$0xff] }
 0x203   : > { %874 = vst [vmem:[%s1583_s4 + $0x8] sm:$0xff] %v872_v10 }
 0x204 PF: > { %s1099_s29 = sshll.u32 %s1378_s22, 2  ;;  %s890_s8 = sshll.u32 %s1583_s4, 4  ;;  %s891_s8 = int_to_ptr.vmem [resolvable:$true] %s890_s8 }
 0x205   : > { %s887_s28 = sadd.s32 %s1382_s23, %s1099_s29  ;;  %s1766_s5 = sld [smem:[#allocation19_spill]] }
 0x206   : > { %s1088_s10 = sshll.u32 %s887_s28, 3  ;;  %s1767_s12 = sand.u32 1, %s1354_s16  }
 0x207   : > { %s876_s15 = scalar_lea.sflag [#allocation5], %s1767_s12 }
 0x20b   : > { %s889_s18 = scalar_lea.hbm %s1766_s5, %s1088_s10  ;;  %s1280_s4 = scalar_lea.hbm %s1766_s5, 64 }
 0x20c   : > { %s892_s7 = sshll.u32 %s889_s18, 4  ;;  %s893_s7 = int_to_ptr.hbm [resolvable:$true] %s892_s7 }
 0x20d   : > { %s1274_s21 = sshra.s32 %s893_s7, 4  ;;  %s1275_s21 = int_to_ptr.hbm [resolvable:$true] %s1274_s21 }
 0x20e   : > { %s1276_s9 = scalar_lea.hbm %s1275_s21, 16  ;;  %p1281_p3 = scmp.lt.s32.totalorder %s1275_s21, %s1766_s5 }
 0x20f   : > { %p1277_p13 = scmp.ne.s32.totalorder %s1275_s21, %s1276_s9  ;;  %p1282_p4 = scmp.lt.s32.totalorder %s1280_s4, %s1276_s9 }
 0x211   : > { %p1278_p0 = pnand %p1277_p13, %p1528_p11  ;;  %p1283_p6 = por %p1282_p4, %p1281_p3 }
 0x213   : > { %p1279_p1 = pneg %p1278_p0 }
 0x215   : > { %p1284_p8 = pnand %p1283_p6, %p1279_p1 }
 0x217   : > { %1287 = shalt.err (!%p1284_p8)
}
 0x218   : > { %s1404_s25 = smov 128   ;;  %s1405_s6 = smov 256  }
 0x219   : > { %s1406_s29 = smov 8  }
 0x21a   : > { %1102 = dma.vmem_to_hbm [thread:$0]  (%p1528_p11), %s891_s8, 256, %s893_s7, %s876_s15, %s1404_s25, %s1405_s6, %s1406_s29  }
 0x21b PF: > { %s1768_s28 = sld [smem:[#allocation9_spill]]  ;;  %p1113_p9 = scmp.ge.s32.totalorder %s1398_s27, 2 }
 0x21d   : > { %p1109_p5 = pnand %p1113_p9, %p1536_p2 }
 0x21f   : > { %p1110_p10 = pneg %p1109_p5 }
 0x221   : > { %s907_s10 = sand.u32 1, %s1768_s28  }
 0x222   : > { %s908_s11 = scalar_lea.sflag [#allocation5], %s907_s10 }
 0x223   : > { %1345 = dma.done.wait (%p1110_p10), %s908_s11, 256  }
 0x224   : > { %1347 = vsyncadd (%p1110_p10), %s908_s11, 4294967040  ;;  %s20_s27 = sadd.s32 1, %s1398_s27   ;;  %s1770_s13 = sld [smem:[#allocation17_spill]] }
 0x225   : > { %p1690_p7 = scmp.ge.s32.totalorder %s20_s27, 10   ;;  %s1771_s8 = sld [smem:[#allocation10_spill]] }
 0x226   : > { %s1772_s20 = sld [smem:[#allocation16_spill]]  ;;  %s1777_s15 = smov %s1354_s16 }
 0x227   : > { %s1773_s22 = sld [smem:[#allocation12_spill]]  ;;  %s1778_s16 = smov %s1358_s17 }
 0x228   : > { %s1774_s30 = sld [smem:[#allocation13_spill]]  ;;  %s1780_s18 = smov %s1366_s19 }
 0x229   : > { %s1775_s25 = sld [smem:[#allocation14_spill]]  ;;  %s1782_s21 = smov %s1386_s24 }
 0x22a   : > { %s1776_s7 = sld [smem:[#allocation15_spill]]  ;;  %s1779_s17 = smov %s1770_s13 }
 0x22b   : > { %s1781_s19 = smov %s1771_s8  ;;  %s1783_s23 = smov %s1394_s26 }
 0x22c   :  { %19 = sbr.rel (!%p1690_p7) target bundleno = 13 (0xd), region = 98 }
 0x22e   : > { %s1784_s24 = smov %s1774_s30 }
 0x230   : > { %s1785_s26 = smov %s1776_s7 }
 0x231   :  { %914 = vsyncpa [#allocation4], 1 }
 0x232   :  { %916 = vsyncpa [#allocation4 + $0x1], 1 }
 0x233   :  { %917 = vsyncpa [#allocation5], 1 }
 0x234   :  { %919 = vsyncpa [#allocation5 + $0x1], 1 }

</bundles_post_ra>
